<compile_context>
chip_gen: v6e
topology: v6e:2x2x1
jax: 0.10.0
libtpu: 0.0.40
codegen_flags: <defaults>
</compile_context>

<pallas_src>
import math

import jax
import jax.numpy as jnp
import numpy as np
from jax import lax
from jax.experimental import pallas as pl
from jax.experimental.pallas import tpu as pltpu

# ----------------------------- "args" for SimpleDrummerNet -----------------------------
INPUT_SIZE = (8, 8)          # args.input_size  -> in_size = 64
OUTPUT_SIZE = (8,)           # args.output_size -> out_size = 8
N_HIDDEN = 32                # args.n_hidden
N_LAYERS = 2                 # args.n_layers (forward below is unrolled for 2 conv + 2 MLP layers)
CHANNELS = 4                 # args.channels
KERNEL = 16                  # args.kernel
DILATION = 1                 # args.dilation
BATCH = 2

IN_SIZE = math.prod(INPUT_SIZE)        # 64
OUT_SIZE = math.prod(OUTPUT_SIZE)      # 8
STRIDE = KERNEL // 16                  # = 1
assert STRIDE == 1, "this kernel is written for stride == 1 (kernel == 16)"

# per-layer conv geometry -- same arithmetic as the PyTorch __init__
DIL0 = 2 ** 0 if DILATION == 3 else DILATION
PAD0 = 3 * (DIL0 + 1)
L1 = int((IN_SIZE + 2 * PAD0 - (DIL0 * (KERNEL - 1) + 1)) / STRIDE + 1)   # 61
DIL1 = 2 ** 1 if DILATION == 3 else DILATION
PAD1 = 3 * (DIL1 + 1)
L2 = int((L1 + 2 * PAD1 - (DIL1 * (KERNEL - 1) + 1)) / STRIDE + 1)        # 58 == cnn_size
CNN_SIZE = L2
F0 = CHANNELS * L1                     # 244 : fused width of the conv0 output (channel-major)
BN_EPS = 1e-5

# lane/sublane-aligned padded geometry (whole (8,128) f32 tiles everywhere)
XK_PAD = 128                           # stage-0 contraction dim: 64 input + 1 bias lane + zeros
BIAS_COL = IN_SIZE                     # x_pad[:, 64] == 1.0 carries the folded conv0 bias
F0_PAD = 256                           # 244 -> 256
H_PAD = 128                            # 32  -> 128
OUT_PAD = 128                          # 8   -> 128 (sliced back to 8 in the wrapper)


# ----------------------------------- Pallas kernel -------------------------------------
def drummer_kernel(x_ref, w0_ref, w1_ref, w2_ref, bias_ref, out_ref):
    # Stage 0: Conv1d(1,C) + eval-BN + bias (bias folded into W0 via the constant-1 input
    # lane), as one Toeplitz matmul, then ReLU (Dropout2d == identity in eval).
    h = jnp.maximum(
        jnp.dot(x_ref[...], w0_ref[...], preferred_element_type=jnp.float32), 0.0
    )                                                        # (B, F0_PAD), padded lanes are 0

    # Stage 1: Conv1d(C,1) + bias + Linear(cnn_size,H) + eval-BN fused into one matmul;
    # bias row is full-width (128 lanes) -> whole-vreg add; then ReLU (Dropout == identity).
    z = jnp.maximum(
        jnp.dot(h, w1_ref[...], preferred_element_type=jnp.float32) + bias_ref[0:1, :], 0.0
    )                                                        # (B, H_PAD), padded lanes are 0

    # Stage 2: Linear(H, out_size); output written lane-dense (B, OUT_PAD).
    out_ref[...] = (
        jnp.dot(z, w2_ref[...], preferred_element_type=jnp.float32) + bias_ref[1:2, :]
    )


def drummer_forward(x, params):
    """Flatten + pad the input in plain JAX, run the gridless kernel, slice the padded output."""
    B = x.shape[0]
    x_flat = x.reshape(B, IN_SIZE).astype(jnp.float32)       # x.view(-1, 1, in_size); channel==1
    x_pad = jnp.concatenate(
        [x_flat,
         jnp.ones((B, 1), jnp.float32),                      # constant bias lane (column 64)
         jnp.zeros((B, XK_PAD - IN_SIZE - 1), jnp.float32)],
        axis=1,
    )                                                        # (B, 128)

    vmem_spec = pl.BlockSpec(memory_space=pltpu.MemorySpace.VMEM)
    out_full = pl.pallas_call(
        drummer_kernel,
        out_shape=jax.ShapeDtypeStruct((B, OUT_PAD), jnp.float32),
        in_specs=[vmem_spec] * 5,
        out_specs=vmem_spec,
    )(x_pad, params["W0"], params["W1"], params["W2"], params["bias_pack"])

    return out_full[:, :OUT_SIZE]                            # (B, out_size)


# ---------------------------- parameters (deterministic init) --------------------------
def init_params(key):
    keys = jax.random.split(key, 12)
    u = lambda k, shape: jax.random.uniform(k, shape, jnp.float32, -0.01, 0.01)

    w0 = u(keys[0], (CHANNELS, 1, KERNEL))       # Conv1d(1, C, K) weight (PyTorch OIW)
    b0 = u(keys[1], (CHANNELS,))
    g0, be0 = u(keys[2], (CHANNELS,)), u(keys[3], (CHANNELS,))     # BatchNorm1d(C) affine
    w1 = u(keys[4], (1, CHANNELS, KERNEL))       # Conv1d(C, 1, K) weight
    b1 = u(keys[5], (1,))
    lw0 = u(keys[6], (N_HIDDEN, CNN_SIZE))       # Linear(cnn_size, H) weight (out, in)
    lb0 = u(keys[7], (N_HIDDEN,))
    g1, be1 = u(keys[8], (N_HIDDEN,)), u(keys[9], (N_HIDDEN,))     # BatchNorm1d(H) affine
    lw1 = u(keys[10], (OUT_SIZE, N_HIDDEN))      # Linear(H, out_size) weight
    lb1 = u(keys[11], (OUT_SIZE,))

    # Eval-mode BatchNorm running statistics (fresh init: mean=0, var=1).  If trained
    # statistics are ever loaded, set rm*/rv* accordingly -- the fold handles the general case.
    rm0, rv0 = np.zeros(CHANNELS, np.float64), np.ones(CHANNELS, np.float64)
    rm1, rv1 = np.zeros(N_HIDDEN, np.float64), np.ones(N_HIDDEN, np.float64)

    # ---------------- host-side folding (float64, cast to float32 at the end) ----------------
    w0n, b0n = np.asarray(w0, np.float64), np.asarray(b0, np.float64)
    g0n, be0n = np.asarray(g0, np.float64), np.asarray(be0, np.float64)
    w1n, b1n = np.asarray(w1, np.float64), np.asarray(b1, np.float64)
    lw0n, lb0n = np.asarray(lw0, np.float64), np.asarray(lb0, np.float64)
    g1n, be1n = np.asarray(g1, np.float64), np.asarray(be1, np.float64)
    lw1n, lb1n = np.asarray(lw1, np.float64), np.asarray(lb1, np.float64)

    s0 = g0n / np.sqrt(rv0 + BN_EPS)             # BN0 scale
    t0 = be0n - rm0 * s0                         # BN0 shift
    s1 = g1n / np.sqrt(rv1 + BN_EPS)             # BN1 scale
    t1 = be1n - rm1 * s1                         # BN1 shift

    # Stage 0: Conv1d(1,C,K,pad=PAD0,dil=DIL0) + BN0 as a padded Toeplitz matmul over the
    # UNPADDED input.  Row BIAS_COL carries the folded bias (multiplied by the constant-1
    # input lane).  Padded rows/columns stay exactly 0 so ReLU(0)=0 downstream.
    W0 = np.zeros((XK_PAD, F0_PAD), np.float64)
    for c in range(CHANNELS):
        for m in range(L1):
            for k in range(KERNEL):
                i = m + k * DIL0 - PAD0          # input position (padding rows dropped)
                if 0 <= i < IN_SIZE:
                    W0[i, c * L1 + m] += w0n[c, 0, k] * s0[c]
    W0[BIAS_COL, :F0] = np.repeat(b0n * s0 + t0, L1)   # bias0, channel-major layout c*L1 + m

    # Stage 1: Conv1d(C,1,K,pad=PAD1,dil=DIL1) + bias + Linear(L2,H) + BN1 fused:
    #   z[b,n] = sum_{c,m} h[b, c*L1+m] * W1[c*L1+m, n] + bias1[n]
    W1 = np.zeros((F0_PAD, H_PAD), np.float64)
    for c in range(CHANNELS):
        for k in range(KERNEL):
            for m in range(L1):
                j = m + PAD1 - k * DIL1          # conv1 output position feeding Linear0
                if 0 <= j < L2:
                    W1[c * L1 + m, :N_HIDDEN] += w1n[0, c, k] * lw0n[:, j]
    W1[:, :N_HIDDEN] *= s1[None, :]
    bias1 = (lb0n + b1n[0] * lw0n.sum(axis=1)) * s1 + t1   # conv1 bias enters every feat column

    # Stage 2: Linear(H, out_size), zero-padded to a full (128, 128) tile.
    W2 = np.zeros((H_PAD, OUT_PAD), np.float64)
    W2[:N_HIDDEN, :OUT_SIZE] = lw1n.T
    bias2 = lb1n

    # Whole-vreg bias rows: row 0 = stage-1 bias (32 real lanes), row 1 = stage-2 bias (8 real).
    bias_pack = np.zeros((2, OUT_PAD), np.float32)
    bias_pack[0, :N_HIDDEN] = bias1
    bias_pack[1, :OUT_SIZE] = bias2

    return dict(
        # fused, tile-aligned kernel parameters (4 weight/bias arrays total)
        W0=jnp.asarray(W0, jnp.float32),
        W1=jnp.asarray(W1, jnp.float32),
        W2=jnp.asarray(W2, jnp.float32),
        bias_pack=jnp.asarray(bias_pack),
        # reference (PyTorch-layout) parameters for the pure-JAX check
        w0=w0, b0_vec=b0,
        bn0_scale_vec=jnp.asarray(s0, jnp.float32), bn0_shift_vec=jnp.asarray(t0, jnp.float32),
        w1=w1, b1_vec=b1,
        lw0=lw0, lb0_vec=lb0,
        bn1_scale_vec=jnp.asarray(s1, jnp.float32), bn1_shift_vec=jnp.asarray(t1, jnp.float32),
        lw1=lw1, lb1_vec=lb1,
    )


# ------------------------------ pure-JAX reference forward -----------------------------
def reference_forward(x, p):
    B = x.shape[0]
    h = x.reshape(B, 1, IN_SIZE).astype(jnp.float32)
    h = lax.conv_general_dilated(h, p["w0"], window_strides=(STRIDE,),
                                 padding=[(PAD0, PAD0)], rhs_dilation=(DIL0,),
                                 dimension_numbers=("NCH", "OIH", "NCH"),
                                 precision=lax.Precision.HIGHEST)
    h = h + p["b0_vec"][None, :, None]
    h = h * p["bn0_scale_vec"][None, :, None] + p["bn0_shift_vec"][None, :, None]
    h = jnp.maximum(h, 0.0)
    h = lax.conv_general_dilated(h, p["w1"], window_strides=(STRIDE,),
                                 padding=[(PAD1, PAD1)], rhs_dilation=(DIL1,),
                                 dimension_numbers=("NCH", "OIH", "NCH"),
                                 precision=lax.Precision.HIGHEST)
    h = h + p["b1_vec"][None, :, None]
    h = h.reshape(B, -1)
    h = jnp.dot(h, p["lw0"].T, precision=lax.Precision.HIGHEST) + p["lb0_vec"]
    h = h * p["bn1_scale_vec"] + p["bn1_shift_vec"]
    h = jnp.maximum(h, 0.0)
    return jnp.dot(h, p["lw1"].T, precision=lax.Precision.HIGHEST) + p["lb1_vec"]


# ---------------------------------------- main ------------------------------------------
if __name__ == "__main__":
    key = jax.random.PRNGKey(0)
    pkey, xkey = jax.random.split(key)
    params = init_params(pkey)
    x = jax.random.normal(xkey, (BATCH,) + INPUT_SIZE, jnp.float32)

    out = drummer_forward(x, params)
    out = jax.block_until_ready(out)

    ref = reference_forward(x, params)
    assert out.shape == (BATCH, OUT_SIZE)
    np.testing.assert_allclose(np.asarray(out), np.asarray(ref), rtol=1e-4, atol=2e-5)
    print("KERNEL_OK")
</pallas_src>

<mosaic_0001>
module attributes {stable_mosaic.version = 11 : i64} {
  func.func @drummer_kernel(%arg0: memref<2x128xf32, #tpu.memory_space<vmem>>, %arg1: memref<128x256xf32, #tpu.memory_space<vmem>>, %arg2: memref<256x128xf32, #tpu.memory_space<vmem>>, %arg3: memref<128x128xf32, #tpu.memory_space<vmem>>, %arg4: memref<2x128xf32, #tpu.memory_space<vmem>>, %arg5: memref<2x128xf32, #tpu.memory_space<vmem>>) attributes {dimension_semantics = [], scalar_prefetch = 0 : i64, scratch_operands = 0 : i64, tpu.core_type = #tpu.core_type<tc>} {
    %c0 = arith.constant 0 : index
    %c0_0 = arith.constant 0 : index
    %0 = vector.load %arg0[%c0, %c0_0] : memref<2x128xf32, #tpu.memory_space<vmem>>, vector<2x128xf32>
    %c0_1 = arith.constant 0 : index
    %c0_2 = arith.constant 0 : index
    %1 = vector.load %arg1[%c0_1, %c0_2] : memref<128x256xf32, #tpu.memory_space<vmem>>, vector<128x256xf32>
    %cst = arith.constant dense<0.000000e+00> : vector<2x256xf32>
    %2 = tpu.matmul %0, %1, %cst {dimension_numbers = #tpu.dot_dimension_numbers<[1], [0], [0], [1], [0, 0, 1, 1], [], []>} : vector<2x128xf32>, vector<128x256xf32>, vector<2x256xf32> -> vector<2x256xf32>
    %cst_3 = arith.constant 0.000000e+00 : f32
    %3 = vector.broadcast %cst_3 : f32 to vector<2x256xf32>
    %4 = arith.maximumf %2, %3 : vector<2x256xf32>
    %c0_4 = arith.constant 0 : index
    %c0_5 = arith.constant 0 : index
    %5 = vector.load %arg2[%c0_4, %c0_5] : memref<256x128xf32, #tpu.memory_space<vmem>>, vector<256x128xf32>
    %cst_6 = arith.constant dense<0.000000e+00> : vector<2x128xf32>
    %6 = tpu.matmul %4, %5, %cst_6 {dimension_numbers = #tpu.dot_dimension_numbers<[1], [0], [0], [1], [0, 0, 1, 1], [], []>} : vector<2x256xf32>, vector<256x128xf32>, vector<2x128xf32> -> vector<2x128xf32>
    %c0_7 = arith.constant 0 : index
    %c0_8 = arith.constant 0 : index
    %7 = vector.load %arg4[%c0_7, %c0_8] : memref<2x128xf32, #tpu.memory_space<vmem>>, vector<1x128xf32>
    %8 = vector.broadcast %7 : vector<1x128xf32> to vector<2x128xf32>
    %9 = arith.addf %6, %8 : vector<2x128xf32>
    %cst_9 = arith.constant 0.000000e+00 : f32
    %10 = vector.broadcast %cst_9 : f32 to vector<2x128xf32>
    %11 = arith.maximumf %9, %10 : vector<2x128xf32>
    %c0_10 = arith.constant 0 : index
    %c0_11 = arith.constant 0 : index
    %12 = vector.load %arg3[%c0_10, %c0_11] : memref<128x128xf32, #tpu.memory_space<vmem>>, vector<128x128xf32>
    %cst_12 = arith.constant dense<0.000000e+00> : vector<2x128xf32>
    %13 = tpu.matmul %11, %12, %cst_12 {dimension_numbers = #tpu.dot_dimension_numbers<[1], [0], [0], [1], [0, 0, 1, 1], [], []>} : vector<2x128xf32>, vector<128x128xf32>, vector<2x128xf32> -> vector<2x128xf32>
    %c1 = arith.constant 1 : index
    %c0_13 = arith.constant 0 : index
    %14 = vector.load %arg4[%c1, %c0_13] : memref<2x128xf32, #tpu.memory_space<vmem>>, vector<1x128xf32>
    %15 = vector.broadcast %14 : vector<1x128xf32> to vector<2x128xf32>
    %16 = arith.addf %13, %15 : vector<2x128xf32>
    %c0_14 = arith.constant 0 : index
    %c0_15 = arith.constant 0 : index
    %17 = vector.load %arg5[%c0_14, %c0_15] : memref<2x128xf32, #tpu.memory_space<vmem>>, vector<2x128xf32>
    tpu.vector_store %arg5[%c0_14, %c0_15], %16 {strides = array<i32>} : memref<2x128xf32, #tpu.memory_space<vmem>>, vector<2x128xf32>,
    return
  }
}

</mosaic_0001>

<bundles_post_ra>
// kernel: tpu_custom_call.1
= control target key start
LH: loop header
LB: loop body
LE: loop exit
PB: predicated region body
PF: predicated region fallthrough
CT: control target
= control target key end

     0   :  { %10 = vsyncpa [#allocation3], 0  ;;  %s685_s0 = inlined_call_operand.hbm [shape: f32[2,128], index: 0, kind: input, shape index: {}]   ;;  %s686_s1 = inlined_call_operand.hbm [shape: f32[128,256], index: 1, kind: input, shape index: {}]   ;;  %s687_s2 = inlined_call_operand.hbm [shape: f32[256,128], index: 2, kind: input, shape index: {}]   ;;  %s688_s3 = inlined_call_operand.hbm [shape: f32[128,128], index: 3, kind: input, shape index: {}]   ;;  %s689_s4 = inlined_call_operand.vmem [shape: f32[2,128], index: 4, kind: input, shape index: {}]   ;;  %s690_s5 = inlined_call_operand.hbm [shape: f32[2,128], index: 5, kind: output, shape index: {}]  }
   0x1   :  { %11 = vsyncpa [#allocation6], 0 }
   0x2   :  { %12 = vsyncpa [#allocation9], 0 }
   0x3   :  { %13 = vsyncpa [#allocation4], 0  ;;  %s605_s18 = smov [#allocation5]  }
   0x4   :  { %s29_s19 = sshll.u32 %s605_s18, 4  ;;  %s30_s19 = int_to_ptr.vmem [resolvable:$true] %s29_s19 }
   0x5   :  { %s505_s20 = scalar_lea.vmem %s30_s19, 4096  ;;  %p510_p1 = scmp.lt.s32.totalorder %s30_s19, %s30_s19 }
   0x6   :  { %p506_p0 = scmp.ne.s32.totalorder %s30_s19, %s505_s20  ;;  %p511_p2 = scmp.lt.s32.totalorder %s505_s20, %s505_s20 }
   0x8   :  { %p512_p3 = por %p511_p2, %p510_p1 }
   0xa   :  { %p513_p4 = pnand %p512_p3, %p506_p0 }
   0xc   :  { %516 = shalt.err (!%p513_p4)
}
   0xd   :  { %s606_s21 = smov 256   ;;  %s607_s22 = smov 16  }
   0xe   :  { %35 = dma.hbm_to_vmem [thread:$0]  %s686_s1, 4096, %s30_s19, [#allocation6], %s606_s21, %s606_s21, %s607_s22  }
   0xf   :  { %s608_s25 = smov [#allocation2]   ;;  %s609_s27 = smov [#allocation7]  }
  0x10   :  { %s20_s26 = sshll.u32 %s608_s25, 4  ;;  %s41_s28 = sshll.u32 %s609_s27, 4  ;;  %s21_s26 = int_to_ptr.vmem [resolvable:$true] %s20_s26  ;;  %s42_s28 = int_to_ptr.vmem [resolvable:$true] %s41_s28 }
  0x11   :  { %s525_s29 = scalar_lea.vmem %s21_s26, 32  ;;  %p530_p6 = scmp.lt.s32.totalorder %s21_s26, %s21_s26 }
  0x12   :  { %p526_p5 = scmp.ne.s32.totalorder %s21_s26, %s525_s29  ;;  %p531_p7 = scmp.lt.s32.totalorder %s525_s29, %s525_s29 }
  0x14   :  { %p532_p8 = por %p531_p7, %p530_p6 }
  0x16   :  { %p533_p9 = pnand %p532_p8, %p526_p5 }
  0x18   :  { %536 = shalt.err (!%p533_p9)
}
  0x19   :  { %23 = dma.hbm_to_vmem [thread:$0]  %s685_s0, 32, %s21_s26, [#allocation3]  }
  0x1a   :  { %s545_s7 = scalar_lea.vmem %s42_s28, 4096  ;;  %p550_p11 = scmp.lt.s32.totalorder %s42_s28, %s42_s28 }
  0x1b   :  { %p546_p10 = scmp.ne.s32.totalorder %s42_s28, %s545_s7  ;;  %p551_p12 = scmp.lt.s32.totalorder %s545_s7, %s545_s7 }
  0x1d   :  { %p552_p13 = por %p551_p12, %p550_p11 }
  0x1f   :  { %p553_p0 = pnand %p552_p13, %p546_p10 }
  0x21   :  { %556 = shalt.err (!%p553_p0)
}
  0x22   :  { %s610_s1 = smov 128   ;;  %s611_s8 = smov 8  }
  0x23   :  { %47 = dma.hbm_to_vmem [thread:$0]  %s687_s2, 4096, %s42_s28, [#allocation6], %s610_s1, %s610_s1, %s611_s8  }
  0x24   :  { %s612_s11 = smov [#allocation8]  }
  0x25   :  { %s53_s12 = sshll.u32 %s612_s11, 4  ;;  %s54_s12 = int_to_ptr.vmem [resolvable:$true] %s53_s12 }
  0x26   :  { %s565_s13 = scalar_lea.vmem %s54_s12, 2048  ;;  %p570_p2 = scmp.lt.s32.totalorder %s54_s12, %s54_s12 }
  0x27   :  { %p566_p1 = scmp.ne.s32.totalorder %s54_s12, %s565_s13  ;;  %p571_p3 = scmp.lt.s32.totalorder %s565_s13, %s565_s13 }
  0x29   :  { %p572_p4 = por %p571_p3, %p570_p2 }
  0x2b   :  { %p573_p5 = pnand %p572_p4, %p566_p1 }
  0x2d   :  { %576 = shalt.err (!%p573_p5)
}
  0x2e   :  { %59 = dma.hbm_to_vmem [thread:$0]  %s688_s3, 2048, %s54_s12, [#allocation9], %s610_s1, %s610_s1, %s611_s8  }
  0x2f   :  { %597 = dma.done.wait [#allocation3], 32  }
  0x30   :  { %598 = vsyncadd [#allocation3], 4294967264 }
  0x31   :  { %599 = dma.done.wait [#allocation6], 8192  }
  0x32   :  { %600 = vsyncadd [#allocation6], 4294959104 }
  0x33   :  { %601 = dma.done.wait [#allocation9], 2048  }
  0x34   :  { %602 = vsyncadd [#allocation9], 4294965248  ;;  %v613_v0 = vmov 0.0   ;;  %v106_v1 = vld [vmem:[#allocation5 + $0xf8] sm:$0xff]  ;;  %v105_v2 = vld [vmem:[#allocation5 + $0xf0] sm:$0xff]  ;;  %vm614_vm0 = vmmov 0  }
  0x35   :  { %171 = vmatprep.mubr.f32.mxu0 %v613_v0  ;;  %v104_v3 = vld [vmem:[#allocation5 + $0xe8] sm:$0xff]  ;;  %107 = vmatprep.subr.mxu0 %v106_v1  ;;  %v103_v4 = vld [vmem:[#allocation5 + $0xe0] sm:$0xff]  ;;  %v102_v5 = vld [vmem:[#allocation5 + $0xd8] sm:$0xff]  ;;  %s615_s17 = smov [#allocation10]  }
  0x36   :  { %108 = vmatpush1.msra.mxu0 %v105_v2  ;;  %v101_v6 = vld [vmem:[#allocation5 + $0xd0] sm:$0xff]  ;;  %v100_v7 = vld [vmem:[#allocation5 + $0xc8] sm:$0xff]  ;;  %v99_v8 = vld [vmem:[#allocation5 + $0xc0] sm:$0xff]  ;;  %s386_s18 = sshll.u32 %s615_s17, 4  ;;  %s387_s18 = int_to_ptr.vmem [resolvable:$true] %s386_s18 }
  0x37   :  { %109 = vmatprep.subr.mxu0 %v104_v3  ;;  %v98_v9 = vld [vmem:[#allocation5 + $0xb8] sm:$0xff]  ;;  %v97_v10 = vld [vmem:[#allocation5 + $0xb0] sm:$0xff]  ;;  %v96_v11 = vld [vmem:[#allocation5 + $0xa8] sm:$0xff]  ;;  %s577_s19 = scalar_lea.vmem %s387_s18, 32  ;;  %p582_p7 = scmp.lt.s32.totalorder %s387_s18, %s387_s18 }
  0x38   :  { %110 = vmatpush1.msra.mxu0 %v103_v4  ;;  %v95_v12 = vld [vmem:[#allocation5 + $0xa0] sm:$0xff]  ;;  %v94_v13 = vld [vmem:[#allocation5 + $0x98] sm:$0xff]  ;;  %v93_v14 = vld [vmem:[#allocation5 + $0x90] sm:$0xff]  ;;  %p578_p6 = scmp.ne.s32.totalorder %s387_s18, %s577_s19  ;;  %p583_p8 = scmp.lt.s32.totalorder %s577_s19, %s577_s19 }
  0x39   :  { %111 = vmatprep.subr.mxu0 %v102_v5  ;;  %v211_v15 = vld [vmem:[#allocation7 + $0xf8] sm:$0xff]  ;;  %v210_v17 = vld [vmem:[#allocation7 + $0xf0] sm:$0xff]  ;;  %v92_v18 = vld [vmem:[#allocation5 + $0x88] sm:$0xff] }
  0x3a   :  { %112 = vmatpush1.msra.mxu0 %v101_v6  ;;  %v195_v16 = vld [vmem:[#allocation7 + $0x78] sm:$0xff]  ;;  %399 = vmatprep.subr.mxu1 %v211_v15  ;;  %v194_v19 = vld [vmem:[#allocation7 + $0x70] sm:$0xff]  ;;  %v91_v20 = vld [vmem:[#allocation5 + $0x80] sm:$0xff]  ;;  %p584_p9 = por %p583_p8, %p582_p7 }
  0x3b   :  { %113 = vmatprep.subr.mxu0 %v100_v7  ;;  %400 = vmatpush3.msra.mxu1 %v195_v16  ;;  %v209_v21 = vld [vmem:[#allocation7 + $0xe8] sm:$0xff]  ;;  %v90_v22 = vld [vmem:[#allocation5 + $0x78] sm:$0xff]  ;;  %v89_v24 = vld [vmem:[#allocation5 + $0x70] sm:$0xff] }
  0x3c   :  { %114 = vmatpush1.msra.mxu0 %v99_v8  ;;  %401 = vmatprep.subr.mxu1 %v210_v17  ;;  %v193_v23 = vld [vmem:[#allocation7 + $0x68] sm:$0xff]  ;;  %v208_v25 = vld [vmem:[#allocation7 + $0xe0] sm:$0xff]  ;;  %v207_v29 = vld [vmem:[#allocation7 + $0xd8] sm:$0xff]  ;;  %p585_p10 = pnand %p584_p9, %p578_p6 }
  0x3d   :  { %115 = vmatprep.subr.mxu0 %v98_v9  ;;  %402 = vmatpush3.msra.mxu1 %v194_v19  ;;  %v88_v26 = vld [vmem:[#allocation5 + $0x68] sm:$0xff]  ;;  %v192_v27 = vld [vmem:[#allocation7 + $0x60] sm:$0xff]  ;;  %v86_v30 = vld [vmem:[#allocation5 + $0x58] sm:$0xff] }
  0x3e   :  { %116 = vmatpush1.msra.mxu0 %v97_v10  ;;  %403 = vmatprep.subr.mxu1 %v209_v21  ;;  %v87_v28 = vld [vmem:[#allocation5 + $0x60] sm:$0xff]  ;;  %v191_v31 = vld [vmem:[#allocation7 + $0x58] sm:$0xff]  ;;  %v85_v32 = vld [vmem:[#allocation5 + $0x50] sm:$0xff] }
  0x3f   :  { %117 = vmatprep.subr.mxu0 %v96_v11  ;;  %404 = vmatpush3.msra.mxu1 %v193_v23  ;;  %v206_v33 = vld [vmem:[#allocation7 + $0xd0] sm:$0xff]  ;;  %v84_v34 = vld [vmem:[#allocation5 + $0x48] sm:$0xff]  ;;  %v83_v36 = vld [vmem:[#allocation5 + $0x40] sm:$0xff] }
  0x40   :  { %118 = vmatpush1.msra.mxu0 %v95_v12  ;;  %405 = vmatprep.subr.mxu1 %v208_v25  ;;  %v190_v35 = vld [vmem:[#allocation7 + $0x50] sm:$0xff]  ;;  %v205_v37 = vld [vmem:[#allocation7 + $0xc8] sm:$0xff]  ;;  %v82_v38 = vld [vmem:[#allocation5 + $0x38] sm:$0xff] }
  0x41   :  { %119 = vmatprep.subr.mxu0 %v94_v13  ;;  %406 = vmatpush3.msra.mxu1 %v192_v27  ;;  %v189_v39 = vld [vmem:[#allocation7 + $0x48] sm:$0xff]  ;;  %v81_v40 = vld [vmem:[#allocation5 + $0x30] sm:$0xff]  ;;  %v204_v41 = vld [vmem:[#allocation7 + $0xc0] sm:$0xff] }
  0x42   :  { %120 = vmatpush1.msra.mxu0 %v93_v14  ;;  %407 = vmatprep.subr.mxu1 %v207_v29  ;;  %v80_v42 = vld [vmem:[#allocation5 + $0x28] sm:$0xff]  ;;  %v188_v43 = vld [vmem:[#allocation7 + $0x40] sm:$0xff]  ;;  %v203_v45 = vld [vmem:[#allocation7 + $0xb8] sm:$0xff] }
  0x43   :  { %121 = vmatprep.subr.mxu0 %v92_v18  ;;  %408 = vmatpush3.msra.mxu1 %v191_v31  ;;  %v79_v44 = vld [vmem:[#allocation5 + $0x20] sm:$0xff]  ;;  %v78_v46 = vld [vmem:[#allocation5 + $0x18] sm:$0xff]  ;;  %v77_v48 = vld [vmem:[#allocation5 + $0x10] sm:$0xff] }
  0x44   :  { %122 = vmatpush1.msra.mxu0 %v91_v20  ;;  %409 = vmatprep.subr.mxu1 %v206_v33  ;;  %v187_v47 = vld [vmem:[#allocation7 + $0x38] sm:$0xff]  ;;  %v202_v49 = vld [vmem:[#allocation7 + $0xb0] sm:$0xff]  ;;  %v76_v50 = vld [vmem:[#allocation5 + $0x8] sm:$0xff] }
  0x45   :  { %123 = vmatprep.subr.mxu0 %v90_v22  ;;  %410 = vmatpush3.msra.mxu1 %v190_v35  ;;  %v186_v51 = vld [vmem:[#allocation7 + $0x30] sm:$0xff]  ;;  %v75_v52 = vld [vmem:[#allocation5] sm:$0xff]  ;;  %v201_v53 = vld [vmem:[#allocation7 + $0xa8] sm:$0xff] }
  0x46   :  { %124 = vmatpush1.msra.mxu0 %v89_v24  ;;  %411 = vmatprep.subr.mxu1 %v205_v37  ;;  %v74_v54 = vld [vmem:[#allocation2] sm:$0x3]  ;;  %v185_v55 = vld [vmem:[#allocation7 + $0x28] sm:$0xff]  ;;  %v200_v56 = vld [vmem:[#allocation7 + $0xa0] sm:$0xff] }
  0x47   :  { %125 = vmatprep.subr.mxu0 %v88_v26  ;;  %412 = vmatpush3.msra.mxu1 %v189_v39  ;;  %v184_v57 = vld [vmem:[#allocation7 + $0x20] sm:$0xff]  ;;  %v199_v58 = vld [vmem:[#allocation7 + $0x98] sm:$0xff]  ;;  %v198_v60 = vld [vmem:[#allocation7 + $0x90] sm:$0xff] }
  0x48   :  { %126 = vmatpush1.msra.mxu0 %v87_v28  ;;  %413 = vmatprep.subr.mxu1 %v204_v41  ;;  %v183_v59 = vld [vmem:[#allocation7 + $0x18] sm:$0xff]  ;;  %v182_v61 = vld [vmem:[#allocation7 + $0x10] sm:$0xff]  ;;  %v197_v62 = vld [vmem:[#allocation7 + $0x88] sm:$0xff] }
  0x49   :  { %127 = vmatprep.subr.mxu0 %v86_v30  ;;  %414 = vmatpush3.msra.mxu1 %v188_v43  ;;  %v181_v63 = vld [vmem:[#allocation7 + $0x8] sm:$0xff]  ;;  %v196_v1 = vld [vmem:[#allocation7 + $0x80] sm:$0xff]  ;;  %v303_v3 = vld [vmem:[#allocation8 + $0x78] sm:$0xff] }
  0x4a   :  { %128 = vmatpush1.msra.mxu0 %v85_v32  ;;  %415 = vmatprep.subr.mxu1 %v203_v45  ;;  %v180_v2 = vld [vmem:[#allocation7] sm:$0xff]  ;;  %v302_v4 = vld [vmem:[#allocation8 + $0x70] sm:$0xff]  ;;  %v301_v5 = vld [vmem:[#allocation8 + $0x68] sm:$0xff] }
  0x4b   :  { %129 = vmatprep.subr.mxu0 %v84_v34  ;;  %416 = vmatpush3.msra.mxu1 %v187_v47  ;;  %v300_v6 = vld [vmem:[#allocation8 + $0x60] sm:$0xff]  ;;  %v299_v7 = vld [vmem:[#allocation8 + $0x58] sm:$0xff]  ;;  %v298_v8 = vld [vmem:[#allocation8 + $0x50] sm:$0xff] }
  0x4c   :  { %130 = vmatpush1.msra.mxu0 %v83_v36  ;;  %417 = vmatprep.subr.mxu1 %v202_v49  ;;  %v297_v9 = vld [vmem:[#allocation8 + $0x48] sm:$0xff]  ;;  %v296_v10 = vld [vmem:[#allocation8 + $0x40] sm:$0xff]  ;;  %v295_v11 = vld [vmem:[#allocation8 + $0x38] sm:$0xff] }
  0x4d   :  { %131 = vmatprep.subr.mxu0 %v82_v38  ;;  %418 = vmatpush3.msra.mxu1 %v186_v51  ;;  %v294_v12 = vld [vmem:[#allocation8 + $0x30] sm:$0xff]  ;;  %v293_v13 = vld [vmem:[#allocation8 + $0x28] sm:$0xff]  ;;  %v292_v18 = vld [vmem:[#allocation8 + $0x20] sm:$0xff] }
  0x4e   :  { %132 = vmatpush1.msra.mxu0 %v81_v40  ;;  %419 = vmatprep.subr.mxu1 %v201_v53  ;;  %v291_v19 = vld [vmem:[#allocation8 + $0x18] sm:$0xff]  ;;  %v290_v20 = vld [vmem:[#allocation8 + $0x10] sm:$0xff]  ;;  %v289_v21 = vld [vmem:[#allocation8 + $0x8] sm:$0xff] }
  0x4f   :  { %133 = vmatprep.subr.mxu0 %v80_v42  ;;  %420 = vmatpush3.msra.mxu1 %v185_v55  ;;  %v288_v22 = vld [vmem:[#allocation8] sm:$0xff]  ;;  %v397_v24 = vld [vmem:[%s689_s4] ss:$0 sm:$0xff]  ;;  %v398_v29 = vld [vmem:[%s689_s4 + $0x1] ss:$0 sm:$0xff] }
  0x50   :  { %134 = vmatpush1.msra.mxu0 %v79_v44  ;;  %421 = vmatprep.subr.mxu1 %v200_v56 }
  0x51   :  { %135 = vmatprep.subr.mxu0 %v78_v46  ;;  %422 = vmatpush3.msra.mxu1 %v184_v57 }
  0x52   :  { %136 = vmatpush1.msra.mxu0 %v77_v48  ;;  %423 = vmatprep.subr.mxu1 %v199_v58 }
  0x53   :  { %137 = vmatprep.subr.mxu0 %v76_v50  ;;  %424 = vmatpush3.msra.mxu1 %v183_v59 }
  0x54   :  { %138 = vmatpush1.msra.mxu0 %v75_v52  ;;  %425 = vmatprep.subr.mxu1 %v198_v60 }
  0x55   :  { %172 = vmatmul.mubr.f32.vlgmr.msra.gmra.mxu0 %v74_v54  ;;  %451 = vmatprep.subr.mxu0 %v613_v0 }
  0x56   :  { %426 = vmatpush3.msra.mxu1 %v182_v61  ;;  %452 = vmatpush3.msra.mxu0 %v303_v3 }
  0x57   :  { %427 = vmatprep.subr.mxu1 %v197_v62  ;;  %453 = vmatprep.subr.mxu0 %v613_v0 }
  0x58   :  { %428 = vmatpush3.msra.mxu1 %v181_v63  ;;  %454 = vmatpush3.msra.mxu0 %v302_v4 }
  0x59   :  { %429 = vmatprep.subr.mxu1 %v196_v1  ;;  %455 = vmatprep.subr.mxu0 %v613_v0 }
  0x5a   :  { %430 = vmatpush3.msra.mxu1 %v180_v2  ;;  %456 = vmatpush3.msra.mxu0 %v301_v5 }
  0x5b   :  { %457 = vmatprep.subr.mxu0 %v613_v0  ;;  %483 = vmatprep.mubr.msk.f32.mxu0 %vm614_vm0, %v613_v0 }
  0x5c   :  { %458 = vmatpush3.msra.mxu0 %v300_v6 }
  0x5d   :  { %459 = vmatprep.subr.mxu0 %v613_v0 }
  0x5e   :  { %460 = vmatpush3.msra.mxu0 %v299_v7 }
  0x5f   :  { %461 = vmatprep.subr.mxu0 %v613_v0 }
  0x60   :  { %462 = vmatpush3.msra.mxu0 %v298_v8 }
  0x61   :  { %463 = vmatprep.subr.mxu0 %v613_v0 }
  0x62   :  { %464 = vmatpush3.msra.mxu0 %v297_v9 }
  0x63   :  { %465 = vmatprep.subr.mxu0 %v613_v0 }
  0x64   :  { %466 = vmatpush3.msra.mxu0 %v296_v10 }
  0x65   :  { %467 = vmatprep.subr.mxu0 %v613_v0 }
  0x66   :  { %468 = vmatpush3.msra.mxu0 %v295_v11 }
  0x67   :  { %469 = vmatprep.subr.mxu0 %v613_v0 }
  0x68   :  { %470 = vmatpush3.msra.mxu0 %v294_v12 }
  0x69   :  { %471 = vmatprep.subr.mxu0 %v613_v0 }
  0x6a   :  { %472 = vmatpush3.msra.mxu0 %v293_v13 }
  0x6b   :  { %473 = vmatprep.subr.mxu0 %v613_v0 }
  0x6c   :  { %474 = vmatpush3.msra.mxu0 %v292_v18 }
  0x6d   :  { %475 = vmatprep.subr.mxu0 %v613_v0 }
  0x6e   :  { %476 = vmatpush3.msra.mxu0 %v291_v19 }
  0x6f   :  { %477 = vmatprep.subr.mxu0 %v613_v0 }
  0x70   :  { %478 = vmatpush3.msra.mxu0 %v290_v20 }
  0x71   :  { %479 = vmatprep.subr.mxu0 %v613_v0 }
  0x72   :  { %480 = vmatpush3.msra.mxu0 %v289_v21 }
  0x73   :  { %481 = vmatprep.subr.mxu0 %v613_v0 }
  0x74   :  { %482 = vmatpush3.msra.mxu0 %v288_v22 }
 0x115   :  { %v173_v14 = vpop.f32.mrf.mxu0 }
 0x116   :  { %v178_v17 = vmax.f32 %v173_v14, 0.0 }
 0x117   :  { %v175_v15 = vpop.f32.mrf.mxu0 }
 0x118   :  { %v179_v16 = vmax.f32 %v175_v15, 0.0 }
 0x11a   :  { %281 = vmatprep.mubr.f32.mxu1 %v179_v16 }
 0x11b   :  { %282 = vmatmul.mubr.f32.vlgmr.msra.gmra.mxu1 %v178_v17 }
 0x1db   :  { %v431_v23 = vpop.f32.mrf.mxu1 }
 0x1dd   :  { %v432_v25 = vpop.f32.mrf.mxu1 }
 0x1de   :  { %v433_v26 = vadd.f32 %v432_v25, %v431_v23 }
 0x1e0   :  { %v284_v27 = vadd.f32 %v433_v26, %v397_v24 }
 0x1e2   :  { %v287_v28 = vmax.f32 %v284_v27, 0.0 }
 0x1e4   :  { %484 = vmatmul.mubr.f32.vlgmr.msra.gmra.mxu0 %v287_v28 }
 0x2a4   :  { %v375_v30 = vpop.f32.mrf.mxu0 }
 0x2a5   :  { %v376_v31 = vadd.f32 %v398_v29, %v375_v30 }
 0x2a6   :  { %v485_v0 = vpop.f32.mrf.mxu0 }
 0x2a7   :  { %379 = vst [vmem:[#allocation10] sm:$0x3] %v376_v31 }
 0x2a8   :  { %588 = shalt.err (!%p585_p10)
}
 0x2a9   :  { %389 = dma.vmem_to_hbm [thread:$0]  %s387_s18, 32, %s690_s5, [#allocation4]  }
 0x2aa   :  { %603 = dma.done.wait [#allocation4], 32  }
 0x2ab   :  { %604 = vsyncadd [#allocation4], 4294967264 }
 0x2ac   :  { %393 = vsyncpa [#allocation3], 1 }
 0x2ad   :  { %394 = vsyncpa [#allocation6], 1 }
 0x2ae   :  { %395 = vsyncpa [#allocation9], 1 }
 0x2af   :  { %396 = vsyncpa [#allocation4], 1 }

</bundles_post_ra>
